<compile_context>
chip_gen: v7x
topology: tpu7x:2x2x1
jax: 0.10.0
libtpu: 0.0.40
codegen_flags: <defaults>
</compile_context>

<pallas_src>
import jax
import jax.numpy as jnp
import numpy as np
from jax.experimental import pallas as pl
from jax.experimental.pallas import tpu as pltpu


def _non_local_kernel(x_ref, cw_ref, sc_ref, out_ref):
    # x_ref  : (Bt, C, Np) f32 VMEM  -- Bt images, channels on sublanes, padded H*W on lanes
    # cw_ref : (5, C, 1)  f32 VMEM   -- rows: [g_w/N, theta_w, phi_w, alpha, beta]
    #                                   alpha = W_w * bn_scale, beta = W_b*bn_scale + bn_shift
    # sc_ref : (4,)       f32 SMEM   -- [g_b/N, theta_b, phi_b, pad_correction]
    x = x_ref[...]                              # (Bt, C, Np)
    C = x.shape[1]

    cw = cw_ref[...]                            # (5, C, 1)
    w_g, w_t, w_p = cw[0:1], cw[1:2], cw[2:3]   # (1, C, 1) each
    alpha, beta = cw[3:4], cw[4:5]              # (1, C, 1)
    b_g, b_t, b_p, corr = sc_ref[0], sc_ref[1], sc_ref[2], sc_ref[3]

    # 1x1 convs == per-channel weighted sums. Pure VPU work, no MXU.
    xg = x * w_g                                # (Bt, C, Np)  (1/N already folded into w_g/b_g)
    xt = x * w_t
    xp = x * w_p
    if C <= 8:
        # tiny static C: unrolled sublane adds
        g_x, th_x, ph_x = xg[:, 0:1, :], xt[:, 0:1, :], xp[:, 0:1, :]
        for c in range(1, C):
            g_x = g_x + xg[:, c:c + 1, :]
            th_x = th_x + xt[:, c:c + 1, :]
            ph_x = ph_x + xp[:, c:c + 1, :]
    else:
        g_x = jnp.sum(xg, axis=1, keepdims=True)
        th_x = jnp.sum(xt, axis=1, keepdims=True)
        ph_x = jnp.sum(xp, axis=1, keepdims=True)
    g_x = g_x + b_g                             # (Bt, 1, Np)
    th_x = th_x + b_t
    ph_x = ph_x + b_p

    # Rank-1 attention: y = theta * ((phi . g) / N). corr cancels the zero-pad tail exactly.
    s = jnp.sum(ph_x * g_x, axis=-1, keepdims=True) - corr      # (Bt, 1, 1)
    y = th_x * s                                                # (Bt, 1, Np)

    # W 1x1 conv + BatchNorm (folded per-channel affine) + residual; single full-tile store.
    out_ref[...] = (x + alpha * y + beta).astype(out_ref.dtype)


def non_local_forward(x_nchw, params, *, block_x_bytes=1 << 19):
    (g_w, g_b, th_w, th_b, ph_w, ph_b,
     W_w, W_b, bn_gamma, bn_beta, bn_mean, bn_var, bn_eps) = params
    B, C, H, Wd = x_nchw.shape
    N = H * Wd
    Np = ((N + 127) // 128) * 128                  # lane-dense last dim (multiple of 128)

    x = x_nchw.reshape(B, C, N).astype(jnp.float32)
    if Np != N:
        x = jnp.pad(x, ((0, 0), (0, 0), (0, Np - N)))

    inv_n = 1.0 / float(N)                         # PyTorch divides f by f.size(-1) == H*W

    # Fold BatchNorm (eval-style) and the W 1x1 conv into a per-channel affine.
    bn_scale = bn_gamma / jnp.sqrt(bn_var + bn_eps)
    bn_shift = bn_beta - bn_mean * bn_scale
    alpha = W_w * bn_scale                          # (C,)
    beta = W_b * bn_scale + bn_shift                # (C,)

    cw = jnp.stack([g_w * inv_n, th_w, ph_w, alpha, beta], axis=0)
    cw = cw.astype(jnp.float32).reshape(5, C, 1)

    # Exact correction for the zero-padded tail of the phi.g reduction.
    corr = (jnp.float32(Np - N) * jnp.asarray(ph_b, jnp.float32)
            * jnp.asarray(g_b, jnp.float32) * jnp.float32(inv_n))
    sc = jnp.stack([
        jnp.asarray(g_b, jnp.float32) * jnp.float32(inv_n),
        jnp.asarray(th_b, jnp.float32),
        jnp.asarray(ph_b, jnp.float32),
        corr,
    ])

    # Batch tiling: amortize per-step pipeline overhead, but keep >= 2 grid steps
    # when B >= 2 so both v7x TensorCores are used.
    per_image_bytes = C * Np * 4
    bt = max(1, min(B, block_x_bytes // per_image_bytes))
    if B >= 2:
        bt = max(1, min(bt, B // 2))
    while B % bt != 0:
        bt -= 1
    grid = (B // bt,)

    out = pl.pallas_call(
        _non_local_kernel,
        out_shape=jax.ShapeDtypeStruct((B, C, Np), jnp.float32),
        grid=grid,
        in_specs=[
            pl.BlockSpec((bt, C, Np), lambda i: (i, 0, 0)),
            pl.BlockSpec((5, C, 1), lambda i: (0, 0, 0)),
            pl.BlockSpec(memory_space=pltpu.MemorySpace.SMEM),
        ],
        out_specs=pl.BlockSpec((bt, C, Np), lambda i: (i, 0, 0)),
        compiler_params=pltpu.CompilerParams(dimension_semantics=("parallel",)),
    )(x, cw, sc)

    return out[:, :, :N].reshape(B, C, H, Wd)


def ref_non_local(x_nchw, params):
    """Pure-JAX reference mirroring the PyTorch forward (explicit (N,N) f)."""
    (g_w, g_b, th_w, th_b, ph_w, ph_b,
     W_w, W_b, gamma, beta, mean, var, eps) = params
    B, C, H, Wd = x_nchw.shape
    N = H * Wd
    xf = x_nchw.reshape(B, C, N).astype(jnp.float32)
    g = jnp.einsum('c,bcn->bn', g_w, xf) + g_b
    th = jnp.einsum('c,bcn->bn', th_w, xf) + th_b
    ph = jnp.einsum('c,bcn->bn', ph_w, xf) + ph_b
    f = th[:, :, None] * ph[:, None, :]                 # (B, N, N)
    y = jnp.einsum('bij,bj->bi', f / N, g)              # (B, N)
    wy = W_w[None, :, None] * y[:, None, :] + W_b[None, :, None]
    scale = gamma / jnp.sqrt(var + eps)
    shift = beta - mean * scale
    bn = wy * scale[None, :, None] + shift[None, :, None]
    return (bn + xf).reshape(B, C, H, Wd)


if __name__ == "__main__":
    B, C, H, Wd = 2, 4, 16, 16      # in_channels = 4, inter_channels = 1
    key = jax.random.PRNGKey(0)
    keys = jax.random.split(key, 10)

    x = jax.random.normal(keys[0], (B, C, H, Wd), dtype=jnp.float32)

    # Parameters with shapes matching Non_local.__init__ (1x1 convs squeezed to (C,)):
    g_w = jax.random.normal(keys[1], (C,), jnp.float32) * 0.1
    g_b = jnp.float32(0.01)
    th_w = jax.random.normal(keys[2], (C,), jnp.float32) * 0.1
    th_b = jnp.float32(-0.02)
    ph_w = jax.random.normal(keys[3], (C,), jnp.float32) * 0.1
    ph_b = jnp.float32(0.03)
    W_w = jax.random.normal(keys[4], (C,), jnp.float32) * 0.1
    W_b = jax.random.normal(keys[5], (C,), jnp.float32) * 0.1
    bn_gamma = jnp.zeros((C,), jnp.float32)   # nn.init.constant_(W[1].weight, 0.0)
    bn_beta = jnp.zeros((C,), jnp.float32)    # nn.init.constant_(W[1].bias,   0.0)
    bn_mean = jnp.zeros((C,), jnp.float32)
    bn_var = jnp.ones((C,), jnp.float32)
    bn_eps = jnp.float32(1e-5)

    params = (g_w, g_b, th_w, th_b, ph_w, ph_b,
              W_w, W_b, bn_gamma, bn_beta, bn_mean, bn_var, bn_eps)

    out = jax.block_until_ready(non_local_forward(x, params))
    ref = ref_non_local(x, params)
    np.testing.assert_allclose(np.asarray(out), np.asarray(ref), rtol=1e-5, atol=1e-5)
    # With gamma = beta = 0 (the PyTorch init) the non-local branch is exactly zero -> z == x.
    np.testing.assert_allclose(np.asarray(out), np.asarray(x), rtol=1e-5, atol=1e-5)

    # Second check: non-trivial BN affine + non-128-aligned spatial (N = 49 pads to 128).
    H2, W2 = 7, 7
    x2 = jax.random.normal(keys[6], (B, C, H2, W2), dtype=jnp.float32)
    params2 = (g_w, g_b, th_w, th_b, ph_w, ph_b, W_w, W_b,
               jnp.full((C,), 0.7, jnp.float32),
               jax.random.normal(keys[7], (C,), jnp.float32) * 0.05,
               jax.random.normal(keys[8], (C,), jnp.float32) * 0.05,
               jnp.abs(jax.random.normal(keys[9], (C,), jnp.float32)) * 0.5 + 0.5,
               bn_eps)
    out2 = jax.block_until_ready(non_local_forward(x2, params2))
    ref2 = ref_non_local(x2, params2)
    np.testing.assert_allclose(np.asarray(out2), np.asarray(ref2), rtol=1e-5, atol=1e-5)

    print("KERNEL_OK")
</pallas_src>

<mosaic_0001>
module attributes {stable_mosaic.version = 11 : i64} {
  func.func @_non_local_kernel(%arg0: i32, %arg1: memref<1x4x256xf32, #tpu.memory_space<vmem>>, %arg2: memref<5x4x1xf32, #tpu.memory_space<vmem>>, %arg3: memref<4xf32, #tpu.memory_space<smem>>, %arg4: memref<1x4x256xf32, #tpu.memory_space<vmem>>) attributes {dimension_semantics = [#tpu.dimension_semantics<parallel>], iteration_bounds = array<i64: 2>, scalar_prefetch = 0 : i64, scratch_operands = 0 : i64, tpu.core_type = #tpu.core_type<tc>, window_params = [{transform_indices = @transform_0, window_bounds = array<i64: 1, 4, 256>}, {pipeline_mode = #tpu.pipeline_mode<synchronous>, transform_indices = @transform_1, window_bounds = array<i64: 5, 4, 1>}, {transform_indices = @transform_2, window_bounds = array<i64: 4>}, {transform_indices = @transform_3, window_bounds = array<i64: 1, 4, 256>}]} {
    %c0 = arith.constant 0 : index
    %c0_0 = arith.constant 0 : index
    %c0_1 = arith.constant 0 : index
    %0 = vector.load %arg1[%c0, %c0_0, %c0_1] : memref<1x4x256xf32, #tpu.memory_space<vmem>>, vector<1x4x256xf32>
    %c0_2 = arith.constant 0 : index
    %c0_3 = arith.constant 0 : index
    %c0_4 = arith.constant 0 : index
    %1 = vector.load %arg2[%c0_2, %c0_3, %c0_4] : memref<5x4x1xf32, #tpu.memory_space<vmem>>, vector<5x4x1xf32>
    %2 = vector.extract_strided_slice %1 {offsets = [0, 0, 0], sizes = [1, 4, 1], strides = [1, 1, 1]} : vector<5x4x1xf32> to vector<1x4x1xf32>
    %3 = vector.extract_strided_slice %1 {offsets = [1, 0, 0], sizes = [1, 4, 1], strides = [1, 1, 1]} : vector<5x4x1xf32> to vector<1x4x1xf32>
    %4 = vector.extract_strided_slice %1 {offsets = [2, 0, 0], sizes = [1, 4, 1], strides = [1, 1, 1]} : vector<5x4x1xf32> to vector<1x4x1xf32>
    %5 = vector.extract_strided_slice %1 {offsets = [3, 0, 0], sizes = [1, 4, 1], strides = [1, 1, 1]} : vector<5x4x1xf32> to vector<1x4x1xf32>
    %6 = vector.extract_strided_slice %1 {offsets = [4, 0, 0], sizes = [1, 4, 1], strides = [1, 1, 1]} : vector<5x4x1xf32> to vector<1x4x1xf32>
    %c0_5 = arith.constant 0 : index
    %7 = memref.load %arg3[%c0_5] : memref<4xf32, #tpu.memory_space<smem>>
    %c1 = arith.constant 1 : index
    %8 = memref.load %arg3[%c1] : memref<4xf32, #tpu.memory_space<smem>>
    %c2 = arith.constant 2 : index
    %9 = memref.load %arg3[%c2] : memref<4xf32, #tpu.memory_space<smem>>
    %c3 = arith.constant 3 : index
    %10 = memref.load %arg3[%c3] : memref<4xf32, #tpu.memory_space<smem>>
    %11 = vector.broadcast %2 : vector<1x4x1xf32> to vector<1x4x256xf32>
    %12 = arith.mulf %0, %11 : vector<1x4x256xf32>
    %13 = vector.broadcast %3 : vector<1x4x1xf32> to vector<1x4x256xf32>
    %14 = arith.mulf %0, %13 : vector<1x4x256xf32>
    %15 = vector.broadcast %4 : vector<1x4x1xf32> to vector<1x4x256xf32>
    %16 = arith.mulf %0, %15 : vector<1x4x256xf32>
    %17 = vector.extract_strided_slice %12 {offsets = [0, 0, 0], sizes = [1, 1, 256], strides = [1, 1, 1]} : vector<1x4x256xf32> to vector<1x1x256xf32>
    %18 = vector.extract_strided_slice %14 {offsets = [0, 0, 0], sizes = [1, 1, 256], strides = [1, 1, 1]} : vector<1x4x256xf32> to vector<1x1x256xf32>
    %19 = vector.extract_strided_slice %16 {offsets = [0, 0, 0], sizes = [1, 1, 256], strides = [1, 1, 1]} : vector<1x4x256xf32> to vector<1x1x256xf32>
    %20 = vector.extract_strided_slice %12 {offsets = [0, 1, 0], sizes = [1, 1, 256], strides = [1, 1, 1]} : vector<1x4x256xf32> to vector<1x1x256xf32>
    %21 = arith.addf %17, %20 : vector<1x1x256xf32>
    %22 = vector.extract_strided_slice %14 {offsets = [0, 1, 0], sizes = [1, 1, 256], strides = [1, 1, 1]} : vector<1x4x256xf32> to vector<1x1x256xf32>
    %23 = arith.addf %18, %22 : vector<1x1x256xf32>
    %24 = vector.extract_strided_slice %16 {offsets = [0, 1, 0], sizes = [1, 1, 256], strides = [1, 1, 1]} : vector<1x4x256xf32> to vector<1x1x256xf32>
    %25 = arith.addf %19, %24 : vector<1x1x256xf32>
    %26 = vector.extract_strided_slice %12 {offsets = [0, 2, 0], sizes = [1, 1, 256], strides = [1, 1, 1]} : vector<1x4x256xf32> to vector<1x1x256xf32>
    %27 = arith.addf %21, %26 : vector<1x1x256xf32>
    %28 = vector.extract_strided_slice %14 {offsets = [0, 2, 0], sizes = [1, 1, 256], strides = [1, 1, 1]} : vector<1x4x256xf32> to vector<1x1x256xf32>
    %29 = arith.addf %23, %28 : vector<1x1x256xf32>
    %30 = vector.extract_strided_slice %16 {offsets = [0, 2, 0], sizes = [1, 1, 256], strides = [1, 1, 1]} : vector<1x4x256xf32> to vector<1x1x256xf32>
    %31 = arith.addf %25, %30 : vector<1x1x256xf32>
    %32 = vector.extract_strided_slice %12 {offsets = [0, 3, 0], sizes = [1, 1, 256], strides = [1, 1, 1]} : vector<1x4x256xf32> to vector<1x1x256xf32>
    %33 = arith.addf %27, %32 : vector<1x1x256xf32>
    %34 = vector.extract_strided_slice %14 {offsets = [0, 3, 0], sizes = [1, 1, 256], strides = [1, 1, 1]} : vector<1x4x256xf32> to vector<1x1x256xf32>
    %35 = arith.addf %29, %34 : vector<1x1x256xf32>
    %36 = vector.extract_strided_slice %16 {offsets = [0, 3, 0], sizes = [1, 1, 256], strides = [1, 1, 1]} : vector<1x4x256xf32> to vector<1x1x256xf32>
    %37 = arith.addf %31, %36 : vector<1x1x256xf32>
    %38 = vector.broadcast %7 : f32 to vector<1x1x256xf32>
    %39 = arith.addf %33, %38 : vector<1x1x256xf32>
    %40 = vector.broadcast %8 : f32 to vector<1x1x256xf32>
    %41 = arith.addf %35, %40 : vector<1x1x256xf32>
    %42 = vector.broadcast %9 : f32 to vector<1x1x256xf32>
    %43 = arith.addf %37, %42 : vector<1x1x256xf32>
    %44 = arith.mulf %43, %39 : vector<1x1x256xf32>
    %cst = arith.constant dense<0.000000e+00> : vector<1x1xf32>
    %45 = vector.multi_reduction <add>, %44, %cst [2] : vector<1x1x256xf32> to vector<1x1xf32>
    %46 = vector.shape_cast %45 : vector<1x1xf32> to vector<1x1x1xf32>
    %47 = vector.broadcast %10 : f32 to vector<1x1x1xf32>
    %48 = arith.subf %46, %47 : vector<1x1x1xf32>
    %49 = vector.broadcast %48 : vector<1x1x1xf32> to vector<1x1x256xf32>
    %50 = arith.mulf %41, %49 : vector<1x1x256xf32>
    %51 = vector.broadcast %5 : vector<1x4x1xf32> to vector<1x4x256xf32>
    %52 = vector.broadcast %50 : vector<1x1x256xf32> to vector<1x4x256xf32>
    %53 = arith.mulf %51, %52 : vector<1x4x256xf32>
    %54 = arith.addf %0, %53 : vector<1x4x256xf32>
    %55 = vector.broadcast %6 : vector<1x4x1xf32> to vector<1x4x256xf32>
    %56 = arith.addf %54, %55 : vector<1x4x256xf32>
    %c0_6 = arith.constant 0 : index
    %c0_7 = arith.constant 0 : index
    %c0_8 = arith.constant 0 : index
    %57 = vector.load %arg4[%c0_6, %c0_7, %c0_8] : memref<1x4x256xf32, #tpu.memory_space<vmem>>, vector<1x4x256xf32>
    tpu.vector_store %arg4[%c0_6, %c0_7, %c0_8], %56 {strides = array<i32>} : memref<1x4x256xf32, #tpu.memory_space<vmem>>, vector<1x4x256xf32>,
    return
  }
  func.func @transform_0(%arg0: i32) -> (i32, i32, i32) {
    %c0_i32 = arith.constant 0 : i32
    %c0_i32_0 = arith.constant 0 : i32
    %c0_i32_1 = arith.constant 0 : i32
    return %arg0, %c0_i32, %c0_i32_0 : i32, i32, i32
  }
  func.func @transform_1(%arg0: i32) -> (i32, i32, i32) {
    %c0_i32 = arith.constant 0 : i32
    %c0_i32_0 = arith.constant 0 : i32
    %c0_i32_1 = arith.constant 0 : i32
    %c0_i32_2 = arith.constant 0 : i32
    return %c0_i32, %c0_i32_0, %c0_i32_1 : i32, i32, i32
  }
  func.func @transform_2(%arg0: i32) -> i32 {
    %c0_i32 = arith.constant 0 : i32
    %c0_i32_0 = arith.constant 0 : i32
    return %c0_i32 : i32
  }
  func.func @transform_3(%arg0: i32) -> (i32, i32, i32) {
    %c0_i32 = arith.constant 0 : i32
    %c0_i32_0 = arith.constant 0 : i32
    %c0_i32_1 = arith.constant 0 : i32
    return %arg0, %c0_i32, %c0_i32_0 : i32, i32, i32
  }
}

</mosaic_0001>

<bundles_post_ra>
// kernel: tpu_custom_call.1
= control target key start
LH: loop header
LB: loop body
LE: loop exit
PB: predicated region body
PF: predicated region fallthrough
CT: control target
= control target key end

     0   :  { %8 = vsyncpa [#allocation4], 0  ;;  %s773_s0 = inlined_call_operand.vmem [shape: f32[2,4,256], index: 0, kind: input, shape index: {}]   ;;  %s774_s1 = inlined_call_operand.vmem [shape: f32[5,4,1], index: 1, kind: input, shape index: {}]   ;;  %s775_s2 = inlined_call_operand.vmem [shape: f32[4], index: 2, kind: input, shape index: {}]   ;;  %s776_s3 = inlined_call_operand.hbm [shape: f32[2,4,256], index: 3, kind: output, shape index: {}]  }
   0x1   :  { %9 = vsyncpa [#allocation3], 0 }
   0x2   :  { %11 = vsyncpa [#allocation3 + $0x1], 0  ;;  %s627_s12 = smov 0   ;;  %s629_s13 = smov 0  }
   0x3   :  { %s631_s14 = smov 0   ;;  %s633_s15 = smov 0  }
   0x4 LB: > { %s648_s16 = sadd.s32 4294967295, %s601_s15   ;;  %s438_s17 = sadd.s32 4294967294, %s601_s15   ;;  %s601_s15 = sphi %s633_s15, %s783_s15   ;;  %s597_s14 = sphi %s631_s14, %s782_s14   ;;  %s593_s13 = sphi %s629_s13, %s781_s13   ;;  %s589_s12 = sphi %s627_s12, %s780_s12  }
   0x5   : > { %s652_s18 = sadd.s32 1, %s601_s15   ;;  %s92_s19 = sadd.s32 1, %s597_s14 }
   0x6   : > { %s89_s20 = ssub.s32 %s601_s15, %s652_s18  ;;  %p102_p0 = scmp.ne.s32.totalorder %s597_s14, %s593_s13 }
   0x7   : > { %p90_p1 = scmp.eq.s32.totalorder %s89_s20, 0  ;;  %p103_p2 = scmp.eq.s32.totalorder %s648_s16, 1 }
   0x8   : > { %p108_p3 = scmp.ne.s32.totalorder %s593_s13, %s589_s12  ;;  %p109_p4 = scmp.eq.s32.totalorder %s438_s17, 1 }
   0x9   : > { %s663_s21 = scalar_select %p90_p1, %s597_s14, %s92_s19  }
   0xa   : > { %p665_p5 = por %p103_p2, %p102_p0  ;;  %p669_p6 = por %p109_p4, %p108_p3 }
   0xb   : > { %p439_p7 = scmp.ge.s32.totalorder %s601_s15, 1  ;;  %p116_p8 = scmp.lt.s32.totalorder %s601_s15, 3 }
   0xc   : > { %p480_p9 = scmp.eq.s32.totalorder %s648_s16, 0  ;;  %s132_s27 = sshll.u32 %s775_s2, 4  ;;  %s133_s27 = int_to_ptr.vmem [resolvable:$true] %s132_s27 }
   0xd   : > { %p676_p10 = pnand %p439_p7, %p116_p8  ;;  %s520_s28 = scalar_lea.vmem %s133_s27, 16 }
   0xe   : > { %p521_p13 = scmp.ne.s32.totalorder %s133_s27, %s520_s28  ;;  %p528_p3 = scmp.lt.s32.totalorder %s133_s27, %s133_s27 }
   0xf   : > { %p472_p11 = pneg %p676_p10  ;;  %p529_p4 = scmp.lt.s32.totalorder %s520_s28, %s520_s28 }
  0x11   : > { %p473_p12 = pnand %p480_p9, %p472_p11  ;;  %p530_p7 = por %p529_p4, %p528_p3 }
  0x13   : > { %p522_p0 = pneg %p473_p12 }
  0x15   : > { %p523_p1 = pnand %p522_p0, %p521_p13 }
  0x17   : > { %p524_p2 = pneg %p523_p1 }
  0x19   : > { %p531_p8 = pnand %p530_p7, %p524_p2 }
  0x1b   : > { %534 = shalt.err (!%p531_p8)
}
  0x1c   : > { %s603_s29 = smov [#allocation2]   ;;  %153 = sbr.rel (%p676_p10) target bundleno = 367 (0x16f), region = 32 }
  0x1d   : > { %475 = dma.vmem_to_smem (!%p473_p12), %s133_s27, 16, %s603_s29, [#allocation4]  }
  0x23   : > { %580 = dma.done.wait (%p480_p9), [#allocation4], 16  }
  0x24   : > { %582 = vsyncadd (%p480_p9), [#allocation4], 4294967280 }
  0x25   : > { %159 = sfence }
  0x26   : > { %v184_v0 = vld [vmem:[%s774_s1] sm:$0xf]  ;;  %v604_v1 = vmov 0   ;;  %v185_v2 = vld [vmem:[%s774_s1 + $0x4] sm:$0xf]  ;;  %p178_p9 = scmp.lt.s32.totalorder %s648_s16, 1  ;;  %v200_v8 = vlaneseq }
  0x27   : > { %518 = vset.pattern.permute.xlu0 %v604_v1  ;;  %519 = vset.pattern.permute.xlu1 %v604_v1  ;;  %v186_v3 = vld [vmem:[%s774_s1 + $0x8] sm:$0xf]  ;;  %v187_v4 = vld [vmem:[%s774_s1 + $0xc] sm:$0xf]  ;;  %v188_v5 = vld [vmem:[%s774_s1 + $0x10] sm:$0xf] }
  0x28   : > { %195 = vperm.xlu0 %518, %v184_v0   ;;  %208 = vperm.xlu1 %519, %v185_v2   ;;  %v605_v6 = vmov 839922192   ;;  %s179_s19 = scalar_select %p178_p9, %s648_s16, 1  ;;  %v201_v10 = vshrl.u32 %v200_v8, 7  ;;  %vm289_vm0 = vcmask 1040384  }
  0x29   : > { %v198_v7 = vunpack.c.l.s4 %v605_v6  ;;  %s189_s27 = sld [smem:[#allocation2]]  ;;  %s448_s28 = sld [smem:[#allocation2 + $0x2]] }
  0x2a   : > { %s464_s20 = sshll.u32 %s179_s19, 3  ;;  %v281_v35 = vsub.s32 0, %v201_v10  ;;  %v285_v36 = vsub.s32 4, %v201_v10  ;;  %s449_s29 = sld [smem:[#allocation2 + $0x3]] }
  0x2b   : > { %v199_v9 = vunpack.c.0.s8 %v198_v7  ;;  %s182_s26 = scalar_lea.vmem %s773_s0, %s464_s20  ;;  %s447_s30 = sld [smem:[#allocation2 + $0x1]] }
  0x2c   : > { %221 = vperm.xlu0 %518, %v186_v3   ;;  %v715_v13 = vld [vmem:[%s182_s26] sm:$0xff]  ;;  %s175_s4 = sand.u32 1, %s593_s13   ;;  %s465_s6 = sshll.u32 %s648_s16, 7 }
  0x2d   : > { %v710_v11 = vsub.s32 %v199_v9, %v201_v10  ;;  %s444_s5 = sshll.u32 %s175_s4, 3  ;;  %s731_s11 = scalar_lea.hbm %s776_s3, %s465_s6 }
  0x2e   : > { %s177_s7 = scalar_lea.vmem [#allocation5], %s444_s5  ;;  %s353_s17 = scalar_lea.sflag [#allocation3], %s175_s4 }
  0x2f   : > { %v271_v30 = vstv %s189_s27  ;;  %v275_v31 = vstv %s448_s28  ;;  %s367_s8 = sshll.u32 %s177_s7, 4  ;;  %s606_s19 = smov [#allocation5]   ;;  %s733_s8 = int_to_ptr.vmem [resolvable:$true] %s367_s8 }
  0x30   : > { %309 = vperm.xlu0 %518, %v187_v4   ;;  %v295_v51 = vstv %s449_s29  ;;  %s535_s16 = scalar_lea.vmem %s733_s8, 128  ;;  %s539_s20 = sshll.u32 %s606_s19, 4  ;;  %s540_s20 = int_to_ptr.vmem [resolvable:$false] %s539_s20 }
  0x31   : > { %v273_v53 = vstv %s447_s30  ;;  %p536_p10 = scmp.ne.s32.totalorder %s733_s8, %s535_s16  ;;  %s541_s24 = scalar_lea.vmem %s540_s20, 256 }
  0x32   : > { %p542_p13 = scmp.lt.s32.totalorder %s733_s8, %s540_s20  ;;  %p543_p0 = scmp.lt.s32.totalorder %s541_s24, %s535_s16 }
  0x33   : > { %p537_p11 = pnand %p536_p10, %p665_p5 }
  0x34   : > { %340 = vperm.xlu0 %518, %v188_v5   ;;  %p544_p1 = por %p543_p0, %p542_p13 }
  0x35   : > { %p538_p12 = pneg %p537_p11 }
  0x37   : > { %p545_p2 = pnand %p544_p1, %p538_p12 }
  0xa7   : > { %v196_v12 = vpop.permute.xlu0 %195  ;;  %v209_v43 = vpop.permute.xlu1 %208 }
  0xa8   : > { %v203_v14 = vrot.slane %v196_v12, %v710_v11  ;;  %v216_v44 = vrot.slane %v209_v43, %v710_v11 }
  0xaa   : > { %v205_v15 = vmul.f32 %v203_v14, %v715_v13  ;;  %v218_v45 = vmul.f32 %v216_v44, %v715_v13 }
  0xab   : > { %v222_v16 = vpop.permute.xlu0 %221 }
  0xac   : > { %v450_v17 = vrot.slane %v205_v15, 9  ;;  %v229_v18 = vrot.slane %v222_v16, %v710_v11  ;;  %v453_v20 = vrot.slane %v205_v15, 10  ;;  %v456_v24 = vrot.slane %v205_v15, 11 }
  0xad   : > { %v451_v46 = vrot.slane %v218_v45, 9  ;;  %v454_v48 = vrot.slane %v218_v45, 10  ;;  %v457_v50 = vrot.slane %v218_v45, 11 }
  0xae   : > { %v236_v19 = vadd.f32 %v450_v17, %v205_v15  ;;  %v231_v21 = vmul.f32 %v229_v18, %v715_v13 }
  0xaf   : > { %v241_v47 = vadd.f32 %v451_v46, %v218_v45  ;;  %v310_v59 = vpop.permute.xlu0 %309 }
  0xb0   : > { %v452_v22 = vrot.slane %v231_v21, 9  ;;  %v250_v23 = vadd.f32 %v453_v20, %v236_v19  ;;  %v455_v26 = vrot.slane %v231_v21, 10  ;;  %v458_v27 = vrot.slane %v231_v21, 11 }
  0xb1   : > { %v254_v49 = vadd.f32 %v454_v48, %v241_v47 }
  0xb2   : > { %v246_v25 = vadd.f32 %v452_v22, %v231_v21  ;;  %v262_v29 = vadd.f32 %v456_v24, %v250_v23 }
  0xb3   : > { %v266_v52 = vadd.f32 %v457_v50, %v254_v49  ;;  %v341_v2 = vpop.permute.xlu0 %340 }
  0xb4   : > { %v258_v28 = vadd.f32 %v455_v26, %v246_v25  ;;  %v272_v33 = vadd.f32 %v271_v30, %v262_v29  ;;  %v348_v4 = vrot.slane %v341_v2, %v710_v11 }
  0xb5   : > { %v274_v56 = vadd.f32 %v273_v53, %v266_v52 }
  0xb6   : > { %v270_v32 = vadd.f32 %v458_v27, %v258_v28 }
  0xb8   : > { %v276_v34 = vadd.f32 %v275_v31, %v270_v32 }
  0xba   : > { %v277_v37 = vmul.f32 %v276_v34, %v272_v33 }
  0xbc   : > { %v282_v38 = vrot.slane %v277_v37, %v281_v35  ;;  %v286_v39 = vrot.slane %v277_v37, %v285_v36 }
  0xbe   : > { %v290_v40 = vsel %vm289_vm0, %v282_v38, 0.0  ;;  %v291_v41 = vsel %vm289_vm0, %v286_v39, 0.0 }
  0xbf   : > { %v292_v42 = vadd.f32 %v291_v41, %v290_v40 }
  0xc1   : > { %293 = vadd.xlane.f32.xlu1 %v292_v42 }
 0x14e   : > { %v294_v54 = vpop.xlane.xlu1 %293 }
 0x14f   : > { %v296_v55 = vsub.f32 %v294_v54, %v295_v51 }
 0x151   : > { %v304_v57 = vrot.slane %v296_v55, %v710_v11 }
 0x153   : > { %v306_v58 = vmul.f32 %v304_v57, %v274_v56 }
 0x155   : > { %v316_v60 = vrot.slane %v306_v58, %v281_v35  ;;  %v320_v61 = vrot.slane %v306_v58, %v285_v36 }
 0x157   : > { %v326_v62 = vrot.slane %v316_v60, %v281_v35  ;;  %v330_v63 = vrot.slane %v320_v61, %v281_v35 }
 0x159   : > { %v331_v0 = vmul.f32 %v326_v62, %v310_v59  ;;  %v332_v1 = vmul.f32 %v330_v63, %v310_v59 }
 0x15b   : > { %v335_v3 = vcombine.low %v331_v0, %v332_v1 }
 0x15d   : > { %v337_v5 = vadd.f32 %v335_v3, %v715_v13 }
 0x15f   : > { %v350_v6 = vadd.f32 %v348_v4, %v337_v5 }
 0x161   : > { %351 = vst [vmem:[%s177_s7] sm:$0xff] %v350_v6 }
 0x162   : > { %548 = shalt.err (!%p545_p2)
}
 0x163   : > { %s549_s25 = scalar_lea.hbm %s731_s11, 128  ;;  %s553_s28 = scalar_lea.hbm %s776_s3, 256 }
 0x164   : > { %p550_p3 = scmp.ne.s32.totalorder %s731_s11, %s549_s25  ;;  %p554_p8 = scmp.lt.u32.totalorder %s731_s11, %s776_s3 }
 0x165   : > { %p555_p9 = scmp.lt.u32.totalorder %s553_s28, %s549_s25  ;;  %p557_p11 = scmp.lt.u32.totalorder %s549_s25, %s731_s11 }
 0x166   : > { %p551_p4 = pnand %p550_p3, %p665_p5 }
 0x167   : > { %p556_p10 = por %p555_p9, %p554_p8 }
 0x168   : > { %p552_p7 = pneg %p551_p4 }
 0x169   : > { %p558_p12 = por %p557_p11, %p556_p10 }
 0x16b   : > { %p559_p13 = pnand %p558_p12, %p552_p7 }
 0x16d   : > { %562 = shalt.err (!%p559_p13)
}
 0x16e   : > { %470 = dma.vmem_to_hbm [thread:$0]  (%p665_p5), %s733_s8, 128, %s731_s11, %s353_s17  }
 0x16f PF: > { %p482_p0 = scmp.ge.s32.totalorder %s601_s15, 2  ;;  %s379_s4 = sand.u32 1, %s589_s12  }
 0x170   : > { %s380_s5 = scalar_lea.sflag [#allocation3], %s379_s4 }
 0x171   : > { %p477_p1 = pnand %p482_p0, %p669_p6 }
 0x173   : > { %584 = dma.done.wait (!%p477_p1), %s380_s5, 128  }
 0x174   : > { %586 = vsyncadd (!%p477_p1), %s380_s5, 4294967168  ;;  %p14_p2 = scmp.ge.s32.totalorder %s652_s18, 4   ;;  %s780_s12 = smov %s593_s13 }
 0x175   : > { %s781_s13 = smov %s597_s14  ;;  %s782_s14 = smov %s663_s21 }
 0x176   : > { %s783_s15 = smov %s652_s18  ;;  %16 = sbr.rel (!%p14_p2) target bundleno = 4 (0x4), region = 72 }
 0x17d   :  { %385 = vsyncpa [#allocation3], 1 }
 0x17e   :  { %387 = vsyncpa [#allocation3 + $0x1], 1 }
 0x17f   :  { %388 = vsyncpa [#allocation4], 1 }
 0x180   :  { %390 = vsyncpa [#allocation4 + $0x1], 1 }

</bundles_post_ra>
